<compile_context>
chip_gen: v6e
topology: v6e:2x2x1
jax: 0.10.0
libtpu: 0.0.40
codegen_flags: <defaults>
</compile_context>

<pallas_src>
import jax
import jax.numpy as jnp
from jax import lax
from jax.experimental import pallas as pl
from jax.experimental.pallas import tpu as pltpu

LANE = 128


def _round_up(v, m):
    return ((v + m - 1) // m) * m


def _vmem_cap_bytes():
    """~75% of physical VMEM; conservative 64 MiB fallback (safe on v7x)."""
    phys = 64 << 20
    try:
        info = pltpu.get_tpu_info()
        phys = int(getattr(info, "vmem_capacity_bytes", phys))
    except Exception:
        pass
    return (phys * 3) // 4


def _make_ff_kernel(n_linear, out_dim):
    """Kernel over one batch tile; params are resident full-array refs."""

    def kernel(*refs):
        x_ref = refs[0]
        w_refs = refs[1:1 + n_linear]
        b_refs = refs[1 + n_linear:1 + 2 * n_linear]
        o_ref = refs[1 + 2 * n_linear]

        h = x_ref[...]                                   # f32 [tile_m, data_p]
        for li in range(n_linear):
            w = w_refs[li][...]
            b = b_refs[li][...]
            lhs = h if h.dtype == w.dtype else h.astype(w.dtype)
            h = jnp.dot(lhs, w, preferred_element_type=jnp.float32)
            h = h + b.astype(jnp.float32)
            if li == 0:
                # sigmoid via tanh -> transcendental lands on the EUP slot.
                h = 0.5 * (jnp.tanh(0.5 * h) + 1.0)
            elif li < n_linear - 1:
                h = jnp.maximum(h, 0.0)                  # ReLU (VPU)

        # Softmax over the true out_dim columns; padded lanes masked out.
        col = lax.broadcasted_iota(jnp.int32, h.shape, 1)
        logits = jnp.where(col < out_dim, h, jnp.float32(-1e30))
        m = jnp.max(logits, axis=1, keepdims=True)
        e = jnp.exp(logits - m)
        denom = jnp.sum(e, axis=1, keepdims=True)
        o_ref[...] = (e / denom).astype(o_ref.dtype)     # exact normalization

    return kernel


def prepare_ff_params(weights, biases, *, param_dtype=jnp.bfloat16):
    """Pad/cast parameters ONCE (hoisted out of the per-call path).

    weights[i]: [in_i, out_i], biases[i]: [out_i].
    Layer 0's input dim is only 8-aligned (it is a matmul K dim, never stored
    lane-dense); all layer output dims are 128-aligned.
    """
    n_linear = len(weights)
    assert n_linear >= 2 and len(biases) == n_linear
    dims = [weights[0].shape[0]] + [w.shape[1] for w in weights]

    data_p = _round_up(dims[0], 8)
    in_p = [data_p] + [_round_up(d, LANE) for d in dims[1:-1]]
    out_p = [_round_up(d, LANE) for d in dims[1:]]

    w_pad, b_pad = [], []
    for i, (w, b) in enumerate(zip(weights, biases)):
        wp = jnp.zeros((in_p[i], out_p[i]), param_dtype)
        wp = wp.at[:w.shape[0], :w.shape[1]].set(w.astype(param_dtype))
        bp = jnp.zeros((1, out_p[i]), jnp.float32)
        bp = bp.at[0, :w.shape[1]].set(jnp.reshape(b, (-1,)).astype(jnp.float32))
        w_pad.append(wp)
        b_pad.append(bp)

    return {
        "w": tuple(w_pad),
        "b": tuple(b_pad),
        "dims": tuple(dims),
        "data_p": data_p,
        "out_p": tuple(out_p),
    }


def ff_classifier_forward(x, params, *, tile_m=None):
    """x: [batch, data_dim]. params: output of prepare_ff_params."""
    dims = params["dims"]
    n_linear = len(params["w"])
    data_dim, out_dim = dims[0], dims[-1]
    data_p = params["data_p"]
    out_pad = params["out_p"][-1]

    batch = x.shape[0]
    if tile_m is None:
        if batch >= 1024:
            tile_m = 512
        elif batch >= 256:
            tile_m = 256
        else:
            tile_m = 128
    batch_p = _round_up(batch, tile_m)

    x_p = x.astype(jnp.float32)
    if (batch_p, data_p) != x_p.shape:
        x_p = jnp.pad(x_p, ((0, batch_p - batch), (0, data_p - data_dim)))

    kernel = _make_ff_kernel(n_linear, out_dim)

    # ---- BlockSpecs: x/out pipelined over the batch grid, params resident ----
    in_specs = [pl.BlockSpec((tile_m, data_p), lambda i: (i, 0))]
    for wp in params["w"]:
        in_specs.append(
            pl.BlockSpec(wp.shape, lambda i: (0, 0), pipeline_mode=pl.Buffered(1)))
    for bp in params["b"]:
        in_specs.append(
            pl.BlockSpec(bp.shape, lambda i: (0, 0), pipeline_mode=pl.Buffered(1)))
    out_spec = pl.BlockSpec((tile_m, out_pad), lambda i: (i, 0))

    # ---- VMEM budget (single-buffered params + double-buffered tiles) ----
    param_bytes = sum(int(a.size) * a.dtype.itemsize
                      for a in params["w"] + params["b"])
    act_bytes = (2 * tile_m * data_p * 4              # x double buffer
                 + 2 * tile_m * out_pad * 4           # out double buffer
                 + 2 * tile_m * max(params["out_p"]) * 4)  # live intermediates
    need = param_bytes + act_bytes
    budget = need + max(need // 4, 2 << 20)
    budget = max(budget, 16 << 20)
    budget = min(budget, _vmem_cap_bytes())

    # Advisory cost estimate on true (unpadded) dims.
    flops = 2 * batch * sum(dims[i] * dims[i + 1] for i in range(n_linear))
    transcendentals = batch * (dims[1] + out_dim)
    bytes_accessed = batch * data_dim * 4 + param_bytes + batch * out_dim * 4

    out_full = pl.pallas_call(
        kernel,
        out_shape=jax.ShapeDtypeStruct((batch_p, out_pad), jnp.float32),
        grid_spec=pltpu.PrefetchScalarGridSpec(
            num_scalar_prefetch=0,
            grid=(batch_p // tile_m,),
            in_specs=in_specs,
            out_specs=out_spec,
        ),
        compiler_params=pltpu.CompilerParams(
            dimension_semantics=("parallel",),
            vmem_limit_bytes=int(budget),
        ),
        cost_estimate=pl.CostEstimate(
            flops=int(flops),
            transcendentals=int(transcendentals),
            bytes_accessed=int(bytes_accessed),
        ),
    )(x_p, *params["w"], *params["b"])

    return out_full[:batch, :out_dim]


def init_ff_params(key, data_dim, hidden_dim, out_dim, num_layers):
    """Xavier-uniform weights, zero biases (matches init_weights in PyTorch)."""
    dims = [data_dim] + [hidden_dim] * num_layers + [out_dim]
    weights, biases = [], []
    for i in range(len(dims) - 1):
        fan_in, fan_out = dims[i], dims[i + 1]
        key, sub = jax.random.split(key)
        bound = (6.0 / (fan_in + fan_out)) ** 0.5
        # stored as [in, out] (transpose of PyTorch's [out, in]); same bound.
        w = jax.random.uniform(sub, (fan_in, fan_out), jnp.float32, -bound, bound)
        b = jnp.zeros((fan_out,), jnp.float32)
        weights.append(w)
        biases.append(b)
    return weights, biases


def _reference_forward(x, weights, biases):
    h = jax.nn.sigmoid(x @ weights[0] + biases[0])
    for i in range(1, len(weights) - 1):
        h = jax.nn.relu(h @ weights[i] + biases[i])
    logits = h @ weights[-1] + biases[-1]
    return jax.nn.softmax(logits, axis=1)


if __name__ == "__main__":
    batch, data_dim, hidden_dim, out_dim, num_layers = 8, 32, 64, 16, 2

    key = jax.random.PRNGKey(0)
    key, xkey = jax.random.split(key)
    x = jax.random.normal(xkey, (batch, data_dim), jnp.float32)

    weights, biases = init_ff_params(key, data_dim, hidden_dim, out_dim, num_layers)
    ref = _reference_forward(x, weights, biases)

    # f32 parameter path: tight check.
    params_f32 = prepare_ff_params(weights, biases, param_dtype=jnp.float32)
    out_f32 = jax.block_until_ready(ff_classifier_forward(x, params_f32))
    assert out_f32.shape == (batch, out_dim)
    assert bool(jnp.allclose(out_f32, ref, atol=5e-3, rtol=5e-3))
    assert bool(jnp.allclose(jnp.sum(out_f32, axis=1), 1.0, atol=1e-5))

    # bf16 weight path (default, fast): loose check, f32 accumulation.
    params_bf16 = prepare_ff_params(weights, biases)
    out_bf16 = jax.block_until_ready(ff_classifier_forward(x, params_bf16))
    assert out_bf16.shape == (batch, out_dim)
    assert bool(jnp.allclose(out_bf16, ref, atol=2e-2, rtol=2e-2))
    assert bool(jnp.allclose(jnp.sum(out_bf16, axis=1), 1.0, atol=1e-5))

    print("KERNEL_OK")
</pallas_src>

<mosaic_0001>
module attributes {stable_mosaic.version = 11 : i64} {
  func.func @kernel(%arg0: i32, %arg1: memref<128x32xf32, #tpu.memory_space<vmem>>, %arg2: memref<32x128xf32, #tpu.memory_space<vmem>>, %arg3: memref<128x128xf32, #tpu.memory_space<vmem>>, %arg4: memref<128x128xf32, #tpu.memory_space<vmem>>, %arg5: memref<1x128xf32, #tpu.memory_space<vmem>>, %arg6: memref<1x128xf32, #tpu.memory_space<vmem>>, %arg7: memref<1x128xf32, #tpu.memory_space<vmem>>, %arg8: memref<128x128xf32, #tpu.memory_space<vmem>>) attributes {dimension_semantics = [#tpu.dimension_semantics<parallel>], iteration_bounds = array<i64: 1>, scalar_prefetch = 0 : i64, scratch_operands = 0 : i64, tpu.core_type = #tpu.core_type<tc>, window_params = [{transform_indices = @transform_0, window_bounds = array<i64: 128, 32>}, {pipeline_mode = #tpu.pipeline_mode<synchronous>, transform_indices = @transform_1, window_bounds = array<i64: 32, 128>}, {pipeline_mode = #tpu.pipeline_mode<synchronous>, transform_indices = @transform_2, window_bounds = array<i64: 128, 128>}, {pipeline_mode = #tpu.pipeline_mode<synchronous>, transform_indices = @transform_3, window_bounds = array<i64: 128, 128>}, {pipeline_mode = #tpu.pipeline_mode<synchronous>, transform_indices = @transform_4, window_bounds = array<i64: 1, 128>}, {pipeline_mode = #tpu.pipeline_mode<synchronous>, transform_indices = @transform_5, window_bounds = array<i64: 1, 128>}, {pipeline_mode = #tpu.pipeline_mode<synchronous>, transform_indices = @transform_6, window_bounds = array<i64: 1, 128>}, {transform_indices = @transform_7, window_bounds = array<i64: 128, 128>}]} {
    %c0 = arith.constant 0 : index
    %c0_0 = arith.constant 0 : index
    %0 = vector.load %arg1[%c0, %c0_0] : memref<128x32xf32, #tpu.memory_space<vmem>>, vector<128x32xf32>
    %c0_1 = arith.constant 0 : index
    %c0_2 = arith.constant 0 : index
    %1 = vector.load %arg2[%c0_1, %c0_2] : memref<32x128xf32, #tpu.memory_space<vmem>>, vector<32x128xf32>
    %c0_3 = arith.constant 0 : index
    %c0_4 = arith.constant 0 : index
    %2 = vector.load %arg5[%c0_3, %c0_4] : memref<1x128xf32, #tpu.memory_space<vmem>>, vector<1x128xf32>
    %cst = arith.constant dense<0.000000e+00> : vector<128x128xf32>
    %3 = tpu.matmul %0, %1, %cst {dimension_numbers = #tpu.dot_dimension_numbers<[1], [0], [0], [1], [0, 0, 1, 1], [], []>} : vector<128x32xf32>, vector<32x128xf32>, vector<128x128xf32> -> vector<128x128xf32>
    %4 = vector.broadcast %2 : vector<1x128xf32> to vector<128x128xf32>
    %5 = arith.addf %3, %4 : vector<128x128xf32>
    %cst_5 = arith.constant 5.000000e-01 : f32
    %6 = vector.broadcast %cst_5 : f32 to vector<128x128xf32>
    %7 = arith.mulf %6, %5 : vector<128x128xf32>
    %8 = math.tanh %7 : vector<128x128xf32>
    %cst_6 = arith.constant 1.000000e+00 : f32
    %9 = vector.broadcast %cst_6 : f32 to vector<128x128xf32>
    %10 = arith.addf %8, %9 : vector<128x128xf32>
    %cst_7 = arith.constant 5.000000e-01 : f32
    %11 = vector.broadcast %cst_7 : f32 to vector<128x128xf32>
    %12 = arith.mulf %11, %10 : vector<128x128xf32>
    %c0_8 = arith.constant 0 : index
    %c0_9 = arith.constant 0 : index
    %13 = vector.load %arg3[%c0_8, %c0_9] : memref<128x128xf32, #tpu.memory_space<vmem>>, vector<128x128xf32>
    %c0_10 = arith.constant 0 : index
    %c0_11 = arith.constant 0 : index
    %14 = vector.load %arg6[%c0_10, %c0_11] : memref<1x128xf32, #tpu.memory_space<vmem>>, vector<1x128xf32>
    %cst_12 = arith.constant dense<0.000000e+00> : vector<128x128xf32>
    %15 = tpu.matmul %12, %13, %cst_12 {dimension_numbers = #tpu.dot_dimension_numbers<[1], [0], [0], [1], [0, 0, 1, 1], [], []>} : vector<128x128xf32>, vector<128x128xf32>, vector<128x128xf32> -> vector<128x128xf32>
    %16 = vector.broadcast %14 : vector<1x128xf32> to vector<128x128xf32>
    %17 = arith.addf %15, %16 : vector<128x128xf32>
    %cst_13 = arith.constant 0.000000e+00 : f32
    %18 = vector.broadcast %cst_13 : f32 to vector<128x128xf32>
    %19 = arith.maximumf %17, %18 : vector<128x128xf32>
    %c0_14 = arith.constant 0 : index
    %c0_15 = arith.constant 0 : index
    %20 = vector.load %arg4[%c0_14, %c0_15] : memref<128x128xf32, #tpu.memory_space<vmem>>, vector<128x128xf32>
    %c0_16 = arith.constant 0 : index
    %c0_17 = arith.constant 0 : index
    %21 = vector.load %arg7[%c0_16, %c0_17] : memref<1x128xf32, #tpu.memory_space<vmem>>, vector<1x128xf32>
    %cst_18 = arith.constant dense<0.000000e+00> : vector<128x128xf32>
    %22 = tpu.matmul %19, %20, %cst_18 {dimension_numbers = #tpu.dot_dimension_numbers<[1], [0], [0], [1], [0, 0, 1, 1], [], []>} : vector<128x128xf32>, vector<128x128xf32>, vector<128x128xf32> -> vector<128x128xf32>
    %23 = vector.broadcast %21 : vector<1x128xf32> to vector<128x128xf32>
    %24 = arith.addf %22, %23 : vector<128x128xf32>
    %25 = tpu.iota {dimensions = array<i32: 1>} : vector<128x128xi32>
    %c16_i32 = arith.constant 16 : i32
    %26 = vector.broadcast %c16_i32 : i32 to vector<128x128xi32>
    %27 = arith.cmpi slt, %25, %26 : vector<128x128xi32>
    %cst_19 = arith.constant -1.000000e+30 : f32
    %28 = vector.broadcast %cst_19 : f32 to vector<128x128xf32>
    %29 = arith.select %27, %24, %28 : vector<128x128xi1>, vector<128x128xf32>
    %cst_20 = arith.constant dense<0xFF800000> : vector<128xf32>
    %30 = vector.multi_reduction <maximumf>, %29, %cst_20 [1] : vector<128x128xf32> to vector<128xf32>
    %31 = vector.shape_cast %30 : vector<128xf32> to vector<128x1xf32>
    %32 = vector.broadcast %31 : vector<128x1xf32> to vector<128x128xf32>
    %33 = arith.subf %29, %32 : vector<128x128xf32>
    %34 = math.exp %33 : vector<128x128xf32>
    %cst_21 = arith.constant dense<0.000000e+00> : vector<128xf32>
    %35 = vector.multi_reduction <add>, %34, %cst_21 [1] : vector<128x128xf32> to vector<128xf32>
    %36 = vector.shape_cast %35 : vector<128xf32> to vector<128x1xf32>
    %37 = vector.broadcast %36 : vector<128x1xf32> to vector<128x128xf32>
    %38 = arith.divf %34, %37 : vector<128x128xf32>
    %c0_22 = arith.constant 0 : index
    %c0_23 = arith.constant 0 : index
    %39 = vector.load %arg8[%c0_22, %c0_23] : memref<128x128xf32, #tpu.memory_space<vmem>>, vector<128x128xf32>
    tpu.vector_store %arg8[%c0_22, %c0_23], %38 {strides = array<i32>} : memref<128x128xf32, #tpu.memory_space<vmem>>, vector<128x128xf32>,
    return
  }
  func.func @transform_0(%arg0: i32) -> (i32, i32) {
    %c0_i32 = arith.constant 0 : i32
    %c0_i32_0 = arith.constant 0 : i32
    return %arg0, %c0_i32 : i32, i32
  }
  func.func @transform_1(%arg0: i32) -> (i32, i32) {
    %c0_i32 = arith.constant 0 : i32
    %c0_i32_0 = arith.constant 0 : i32
    %c0_i32_1 = arith.constant 0 : i32
    return %c0_i32, %c0_i32_0 : i32, i32
  }
  func.func @transform_2(%arg0: i32) -> (i32, i32) {
    %c0_i32 = arith.constant 0 : i32
    %c0_i32_0 = arith.constant 0 : i32
    %c0_i32_1 = arith.constant 0 : i32
    return %c0_i32, %c0_i32_0 : i32, i32
  }
  func.func @transform_3(%arg0: i32) -> (i32, i32) {
    %c0_i32 = arith.constant 0 : i32
    %c0_i32_0 = arith.constant 0 : i32
    %c0_i32_1 = arith.constant 0 : i32
    return %c0_i32, %c0_i32_0 : i32, i32
  }
  func.func @transform_4(%arg0: i32) -> (i32, i32) {
    %c0_i32 = arith.constant 0 : i32
    %c0_i32_0 = arith.constant 0 : i32
    %c0_i32_1 = arith.constant 0 : i32
    return %c0_i32, %c0_i32_0 : i32, i32
  }
  func.func @transform_5(%arg0: i32) -> (i32, i32) {
    %c0_i32 = arith.constant 0 : i32
    %c0_i32_0 = arith.constant 0 : i32
    %c0_i32_1 = arith.constant 0 : i32
    return %c0_i32, %c0_i32_0 : i32, i32
  }
  func.func @transform_6(%arg0: i32) -> (i32, i32) {
    %c0_i32 = arith.constant 0 : i32
    %c0_i32_0 = arith.constant 0 : i32
    %c0_i32_1 = arith.constant 0 : i32
    return %c0_i32, %c0_i32_0 : i32, i32
  }
  func.func @transform_7(%arg0: i32) -> (i32, i32) {
    %c0_i32 = arith.constant 0 : i32
    %c0_i32_0 = arith.constant 0 : i32
    return %arg0, %c0_i32 : i32, i32
  }
}

</mosaic_0001>

<bundles_post_ra>
// kernel: tpu_custom_call.1
= control target key start
LH: loop header
LB: loop body
LE: loop exit
PB: predicated region body
PF: predicated region fallthrough
CT: control target
= control target key end

     0   :  { %12 = vsyncpa [#allocation3], 0  ;;  %s1721_s0 = inlined_call_operand.vmem [shape: f32[128,32], index: 0, kind: input, shape index: {}]   ;;  %s1722_s1 = inlined_call_operand.vmem [shape: f32[32,128], index: 1, kind: input, shape index: {}]   ;;  %s1723_s2 = inlined_call_operand.vmem [shape: f32[128,128], index: 2, kind: input, shape index: {}]   ;;  %s1724_s3 = inlined_call_operand.hbm [shape: f32[128,128], index: 3, kind: input, shape index: {}]   ;;  %s1725_s4 = inlined_call_operand.vmem [shape: f32[1,128], index: 4, kind: input, shape index: {}]   ;;  %s1726_s5 = inlined_call_operand.vmem [shape: f32[1,128], index: 5, kind: input, shape index: {}]   ;;  %s1727_s6 = inlined_call_operand.vmem [shape: f32[1,128], index: 6, kind: input, shape index: {}]   ;;  %s1728_s7 = inlined_call_operand.hbm [shape: f32[128,128], index: 7, kind: output, shape index: {}]  }
   0x1   :  { %13 = vsyncpa [#allocation4], 0  ;;  %s1297_s24 = smov [#allocation2]  }
   0x2   :  { %s25_s25 = sshll.u32 %s1297_s24, 4  ;;  %s26_s25 = int_to_ptr.vmem [resolvable:$true] %s25_s25 }
   0x3   :  { %s1261_s26 = scalar_lea.vmem %s26_s25, 2048  ;;  %p1266_p1 = scmp.lt.s32.totalorder %s26_s25, %s26_s25 }
   0x4   :  { %p1262_p0 = scmp.ne.s32.totalorder %s26_s25, %s1261_s26  ;;  %p1267_p2 = scmp.lt.s32.totalorder %s1261_s26, %s1261_s26 }
   0x6   :  { %p1268_p3 = por %p1267_p2, %p1266_p1 }
   0x8   :  { %p1269_p4 = pnand %p1268_p3, %p1262_p0 }
   0xa   :  { %1272 = shalt.err (!%p1269_p4)
}
   0xb   :  { %s1298_s27 = smov 128   ;;  %s1299_s28 = smov 8  }
   0xc   :  { %31 = dma.hbm_to_vmem [thread:$0]  %s1724_s3, 2048, %s26_s25, [#allocation3], %s1298_s27, %s1298_s27, %s1299_s28  }
   0xd   :  { %1293 = dma.done.wait [#allocation3], 2048  }
   0xe   :  { %1294 = vsyncadd [#allocation3], 4294965248  ;;  %vm68_vm0 = vcmask 261120   ;;  %v60_v0 = vld [vmem:[%s1722_s1 + $0x18] sm:$0xff]  ;;  %v59_v1 = vld [vmem:[%s1722_s1 + $0x10] sm:$0xff] }
   0xf   :  { %977 = vmatprep.subr.mxu0 %v60_v0  ;;  %v41_v2 = vld [vmem:[%s1721_s0] sm:$0xff]  ;;  %v58_v3 = vld [vmem:[%s1722_s1 + $0x8] sm:$0xff]  ;;  %v341_v6 = vld [vmem:[%s1723_s2 + $0x78] sm:$0xff] }
  0x10   :  { %978 = vmatpush3.msra.mxu0 %v60_v0  ;;  %985 = vmatprep.mubr.msk.f32.mxu0 %vm68_vm0, %v41_v2  ;;  %v57_v4 = vld [vmem:[%s1722_s1] sm:$0xff]  ;;  %v42_v5 = vld [vmem:[%s1721_s0 + $0x8] sm:$0xff]  ;;  %v43_v7 = vld [vmem:[%s1721_s0 + $0x10] sm:$0xff] }
  0x11   :  { %979 = vmatprep.subr.mxu0 %v59_v1  ;;  %1009 = vmatprep.subr.mxu1 %v341_v6  ;;  %v340_v8 = vld [vmem:[%s1723_s2 + $0x70] sm:$0xff]  ;;  %v339_v9 = vld [vmem:[%s1723_s2 + $0x68] sm:$0xff]  ;;  %v44_v10 = vld [vmem:[%s1721_s0 + $0x18] sm:$0xff] }
  0x12   :  { %980 = vmatpush3.msra.mxu0 %v59_v1  ;;  %1010 = vmatpush3.msra.mxu1 %v341_v6  ;;  %v45_v11 = vld [vmem:[%s1721_s0 + $0x20] sm:$0xff]  ;;  %v46_v12 = vld [vmem:[%s1721_s0 + $0x28] sm:$0xff]  ;;  %v47_v13 = vld [vmem:[%s1721_s0 + $0x30] sm:$0xff] }
  0x13   :  { %981 = vmatprep.subr.mxu0 %v58_v3  ;;  %1011 = vmatprep.subr.mxu1 %v340_v8  ;;  %v48_v14 = vld [vmem:[%s1721_s0 + $0x38] sm:$0xff]  ;;  %v49_v15 = vld [vmem:[%s1721_s0 + $0x40] sm:$0xff]  ;;  %v50_v16 = vld [vmem:[%s1721_s0 + $0x48] sm:$0xff] }
  0x14   :  { %982 = vmatpush3.msra.mxu0 %v58_v3  ;;  %1012 = vmatpush3.msra.mxu1 %v340_v8  ;;  %v51_v17 = vld [vmem:[%s1721_s0 + $0x50] sm:$0xff]  ;;  %v52_v18 = vld [vmem:[%s1721_s0 + $0x58] sm:$0xff]  ;;  %v53_v19 = vld [vmem:[%s1721_s0 + $0x60] sm:$0xff] }
  0x15   :  { %983 = vmatprep.subr.mxu0 %v57_v4  ;;  %1013 = vmatprep.subr.mxu1 %v339_v9  ;;  %v54_v20 = vld [vmem:[%s1721_s0 + $0x68] sm:$0xff]  ;;  %v55_v21 = vld [vmem:[%s1721_s0 + $0x70] sm:$0xff]  ;;  %v56_v22 = vld [vmem:[%s1721_s0 + $0x78] sm:$0xff] }
  0x16   :  { %984 = vmatpush3.msra.mxu0 %v57_v4  ;;  %1014 = vmatpush3.msra.mxu1 %v339_v9  ;;  %v338_v23 = vld [vmem:[%s1723_s2 + $0x60] sm:$0xff]  ;;  %v337_v24 = vld [vmem:[%s1723_s2 + $0x58] sm:$0xff]  ;;  %v336_v25 = vld [vmem:[%s1723_s2 + $0x50] sm:$0xff] }
  0x17   :  { %986 = vmatmul.mubr.msk.f32.vlgmr.msra.gmra.mxu0 %vm68_vm0, %v42_v5  ;;  %1015 = vmatprep.subr.mxu1 %v338_v23  ;;  %v335_v26 = vld [vmem:[%s1723_s2 + $0x48] sm:$0xff]  ;;  %v334_v27 = vld [vmem:[%s1723_s2 + $0x40] sm:$0xff]  ;;  %v333_v28 = vld [vmem:[%s1723_s2 + $0x38] sm:$0xff] }
  0x18   :  { %988 = vmatprep.mubr.msk.f32.mxu0 %vm68_vm0, %v43_v7  ;;  %1016 = vmatpush3.msra.mxu1 %v338_v23  ;;  %v332_v29 = vld [vmem:[%s1723_s2 + $0x30] sm:$0xff]  ;;  %v331_v30 = vld [vmem:[%s1723_s2 + $0x28] sm:$0xff]  ;;  %v330_v31 = vld [vmem:[%s1723_s2 + $0x20] sm:$0xff] }
  0x19   :  { %1017 = vmatprep.subr.mxu1 %v337_v24  ;;  %v329_v32 = vld [vmem:[%s1723_s2 + $0x18] sm:$0xff]  ;;  %v328_v33 = vld [vmem:[%s1723_s2 + $0x10] sm:$0xff]  ;;  %v327_v34 = vld [vmem:[%s1723_s2 + $0x8] sm:$0xff] }
  0x1a   :  { %1018 = vmatpush3.msra.mxu1 %v337_v24  ;;  %v326_v35 = vld [vmem:[%s1723_s2] sm:$0xff]  ;;  %v1471_v36 = vld [vmem:[#allocation2 + $0x78] sm:$0xff]  ;;  %v1473_v37 = vld [vmem:[#allocation2 + $0x70] sm:$0xff] }
  0x1b   :  { %989 = vmatmul.mubr.msk.f32.gmra.mxu0 %vm68_vm0, %v44_v10  ;;  %1019 = vmatprep.subr.mxu1 %v336_v25  ;;  %v1478_v38 = vld [vmem:[#allocation2 + $0x68] sm:$0xff]  ;;  %v1482_v39 = vld [vmem:[#allocation2 + $0x60] sm:$0xff]  ;;  %v1486_v40 = vld [vmem:[#allocation2 + $0x58] sm:$0xff] }
  0x1c   :  { %991 = vmatprep.mubr.msk.f32.mxu0 %vm68_vm0, %v45_v11  ;;  %1020 = vmatpush3.msra.mxu1 %v336_v25  ;;  %v1490_v41 = vld [vmem:[#allocation2 + $0x50] sm:$0xff]  ;;  %v1494_v42 = vld [vmem:[#allocation2 + $0x48] sm:$0xff]  ;;  %v1498_v43 = vld [vmem:[#allocation2 + $0x40] sm:$0xff] }
  0x1d   :  { %1021 = vmatprep.subr.mxu1 %v335_v26  ;;  %1065 = vmatprep.subr.mxu0 %v1471_v36  ;;  %v1502_v44 = vld [vmem:[#allocation2 + $0x38] sm:$0xff]  ;;  %v1506_v45 = vld [vmem:[#allocation2 + $0x30] sm:$0xff]  ;;  %v1510_v46 = vld [vmem:[#allocation2 + $0x28] sm:$0xff] }
  0x1e   :  { %1022 = vmatpush3.msra.mxu1 %v335_v26  ;;  %1066 = vmatpush3.msra.mxu0 %v1471_v36  ;;  %v1514_v47 = vld [vmem:[#allocation2 + $0x20] sm:$0xff]  ;;  %v1518_v48 = vld [vmem:[#allocation2 + $0x18] sm:$0xff] }
  0x1f   :  { %992 = vmatmul.mubr.msk.f32.gmra.mxu0 %vm68_vm0, %v46_v12  ;;  %1023 = vmatprep.subr.mxu1 %v334_v27  ;;  %v1527_v49 = vld [vmem:[%s1725_s4] ss:$0 sm:$0xff] }
  0x20   :  { %994 = vmatprep.mubr.msk.f32.mxu0 %vm68_vm0, %v47_v13  ;;  %1024 = vmatpush3.msra.mxu1 %v334_v27 }
  0x21   :  { %1025 = vmatprep.subr.mxu1 %v333_v28  ;;  %1067 = vmatprep.subr.mxu0 %v1473_v37 }
  0x22   :  { %1026 = vmatpush3.msra.mxu1 %v333_v28  ;;  %1068 = vmatpush3.msra.mxu0 %v1473_v37 }
  0x23   :  { %995 = vmatmul.mubr.msk.f32.gmra.mxu0 %vm68_vm0, %v48_v14  ;;  %1027 = vmatprep.subr.mxu1 %v332_v29 }
  0x24   :  { %997 = vmatprep.mubr.msk.f32.mxu0 %vm68_vm0, %v49_v15  ;;  %1028 = vmatpush3.msra.mxu1 %v332_v29 }
  0x25   :  { %1029 = vmatprep.subr.mxu1 %v331_v30  ;;  %1069 = vmatprep.subr.mxu0 %v1478_v38 }
  0x26   :  { %1030 = vmatpush3.msra.mxu1 %v331_v30  ;;  %1070 = vmatpush3.msra.mxu0 %v1478_v38 }
  0x27   :  { %998 = vmatmul.mubr.msk.f32.gmra.mxu0 %vm68_vm0, %v50_v16  ;;  %1031 = vmatprep.subr.mxu1 %v330_v31 }
  0x28   :  { %1000 = vmatprep.mubr.msk.f32.mxu0 %vm68_vm0, %v51_v17  ;;  %1032 = vmatpush3.msra.mxu1 %v330_v31 }
  0x29   :  { %1033 = vmatprep.subr.mxu1 %v329_v32  ;;  %1071 = vmatprep.subr.mxu0 %v1482_v39 }
  0x2a   :  { %1034 = vmatpush3.msra.mxu1 %v329_v32  ;;  %1072 = vmatpush3.msra.mxu0 %v1482_v39 }
  0x2b   :  { %1001 = vmatmul.mubr.msk.f32.gmra.mxu0 %vm68_vm0, %v52_v18  ;;  %1035 = vmatprep.subr.mxu1 %v328_v33 }
  0x2c   :  { %1003 = vmatprep.mubr.msk.f32.mxu0 %vm68_vm0, %v53_v19  ;;  %1036 = vmatpush3.msra.mxu1 %v328_v33 }
  0x2d   :  { %1037 = vmatprep.subr.mxu1 %v327_v34  ;;  %1073 = vmatprep.subr.mxu0 %v1486_v40 }
  0x2e   :  { %1038 = vmatpush3.msra.mxu1 %v327_v34  ;;  %1074 = vmatpush3.msra.mxu0 %v1486_v40 }
  0x2f   :  { %1004 = vmatmul.mubr.msk.f32.gmra.mxu0 %vm68_vm0, %v54_v20  ;;  %1039 = vmatprep.subr.mxu1 %v326_v35 }
  0x30   :  { %1006 = vmatprep.mubr.msk.f32.mxu0 %vm68_vm0, %v55_v21  ;;  %1040 = vmatpush3.msra.mxu1 %v326_v35 }
  0x31   :  { %1121 = vmatprep.subr.mxu1 %v1471_v36  ;;  %1075 = vmatprep.subr.mxu0 %v1490_v41 }
  0x32   :  { %1076 = vmatpush3.msra.mxu0 %v1490_v41 }
  0x33   :  { %1007 = vmatmul.mubr.msk.f32.gmra.mxu0 %vm68_vm0, %v56_v22  ;;  %1077 = vmatprep.subr.mxu0 %v1494_v42 }
  0x34   :  { %1078 = vmatpush3.msra.mxu0 %v1494_v42 }
  0x35   :  { %1079 = vmatprep.subr.mxu0 %v1498_v43 }
  0x36   :  { %1080 = vmatpush3.msra.mxu0 %v1498_v43 }
  0x37   :  { %1081 = vmatprep.subr.mxu0 %v1502_v44 }
  0x38   :  { %1082 = vmatpush3.msra.mxu0 %v1502_v44 }
  0x39   :  { %1083 = vmatprep.subr.mxu0 %v1506_v45 }
  0x3a   :  { %1084 = vmatpush3.msra.mxu0 %v1506_v45 }
  0x3b   :  { %1085 = vmatprep.subr.mxu0 %v1510_v46 }
  0x3c   :  { %1086 = vmatpush3.msra.mxu0 %v1510_v46 }
  0x3d   :  { %1087 = vmatprep.subr.mxu0 %v1514_v47 }
  0x3e   :  { %1088 = vmatpush3.msra.mxu0 %v1514_v47 }
  0x3f   :  { %1089 = vmatprep.subr.mxu0 %v1518_v48 }
  0x40   :  { %1090 = vmatpush3.msra.mxu0 %v1518_v48 }
  0xd7   :  { %v987_v50 = vpop.f32.mrf.mxu0 }
  0xd8   :  { %v189_v51 = vadd.f32 %v987_v50, %v1527_v49 }
  0xd9   :  { %v183_v52 = vpop.f32.mrf.mxu0 }
  0xda   :  { %v263_v53 = vmul.f32 0.5, %v189_v51  ;;  %v184_v54 = vadd.f32 %v1527_v49, %v183_v52 }
  0xdb   :  { %v990_v55 = vpop.f32.mrf.mxu0 }
  0xdc   :  { %1157 = vtanh.f32 %v263_v53  ;;  %v262_v56 = vmul.f32 0.5, %v184_v54  ;;  %v199_v57 = vadd.f32 %v990_v55, %v1527_v49 }
  0xdd   :  { %v193_v58 = vpop.f32.mrf.mxu0 }
  0xde   :  { %1159 = vtanh.f32 %v262_v56  ;;  %v265_v59 = vmul.f32 0.5, %v199_v57  ;;  %v194_v60 = vadd.f32 %v1527_v49, %v193_v58 }
  0xdf   :  { %v993_v61 = vpop.f32.mrf.mxu0 }
  0xe0   :  { %1161 = vtanh.f32 %v265_v59  ;;  %v264_v62 = vmul.f32 0.5, %v194_v60  ;;  %v209_v63 = vadd.f32 %v993_v61, %v1527_v49 }
  0xe1   :  { %v203_v0 = vpop.f32.mrf.mxu0 }
  0xe2   :  { %1163 = vtanh.f32 %v264_v62  ;;  %v267_v1 = vmul.f32 0.5, %v209_v63  ;;  %v204_v2 = vadd.f32 %v1527_v49, %v203_v0 }
  0xe3   :  { %v996_v3 = vpop.f32.mrf.mxu0 }
  0xe4   :  { %1165 = vtanh.f32 %v267_v1  ;;  %v266_v4 = vmul.f32 0.5, %v204_v2  ;;  %v219_v5 = vadd.f32 %v996_v3, %v1527_v49 }
  0xe5   :  { %v213_v6 = vpop.f32.mrf.mxu0 }
  0xe6   :  { %1167 = vtanh.f32 %v266_v4  ;;  %v269_v7 = vmul.f32 0.5, %v219_v5  ;;  %v214_v8 = vadd.f32 %v1527_v49, %v213_v6 }
  0xe7   :  { %v999_v9 = vpop.f32.mrf.mxu0 }
  0xe8   :  { %1169 = vtanh.f32 %v269_v7  ;;  %v268_v10 = vmul.f32 0.5, %v214_v8  ;;  %v229_v11 = vadd.f32 %v999_v9, %v1527_v49 }
  0xe9   :  { %v1158_v12 = vpop.eup %1157  ;;  %v223_v13 = vpop.f32.mrf.mxu0 }
  0xea   :  { %1171 = vtanh.f32 %v268_v10  ;;  %v271_v14 = vmul.f32 0.5, %v229_v11  ;;  %v224_v15 = vadd.f32 %v1527_v49, %v223_v13  ;;  %v295_v18 = vadd.f32 1.0, %v1158_v12 }
  0xeb   :  { %v1160_v16 = vpop.eup %1159  ;;  %v1002_v17 = vpop.f32.mrf.mxu0 }
  0xec   :  { %1173 = vtanh.f32 %v271_v14  ;;  %v270_v19 = vmul.f32 0.5, %v224_v15  ;;  %v239_v20 = vadd.f32 %v1002_v17, %v1527_v49  ;;  %v294_v21 = vadd.f32 1.0, %v1160_v16 }
  0xed   :  { %v1162_v22 = vpop.eup %1161  ;;  %v233_v23 = vpop.f32.mrf.mxu0  ;;  %v311_v29 = vmul.f32 0.5, %v295_v18 }
  0xee   :  { %1175 = vtanh.f32 %v270_v19  ;;  %v273_v24 = vmul.f32 0.5, %v239_v20  ;;  %v234_v25 = vadd.f32 %v1527_v49, %v233_v23  ;;  %v310_v26 = vmul.f32 0.5, %v294_v21  ;;  %v512_v21 = vld [vmem:[#allocation2 + $0x10] sm:$0xff] }
  0xef   :  { %v1164_v27 = vpop.eup %1163  ;;  %v1005_v28 = vpop.f32.mrf.mxu0  ;;  %v297_v30 = vadd.f32 1.0, %v1162_v22  ;;  %1091 = vmatprep.subr.mxu0 %v512_v21  ;;  %v510_v22 = vld [vmem:[#allocation2] sm:$0xff] }
  0xf0   :  { %1177 = vtanh.f32 %v273_v24  ;;  %v272_v31 = vmul.f32 0.5, %v234_v25  ;;  %v249_v32 = vadd.f32 %v1005_v28, %v1527_v49  ;;  %1041 = vmatprep.mubr.f32.mxu1 %v310_v26  ;;  %v296_v33 = vadd.f32 1.0, %v1164_v27  ;;  %1092 = vmatpush3.msra.mxu0 %v512_v21 }
  0xf1   :  { %v1166_v34 = vpop.eup %1165  ;;  %v243_v35 = vpop.f32.mrf.mxu0  ;;  %1042 = vmatmul.mubr.f32.vlgmr.msra.gmra.mxu1 %v311_v29  ;;  %v313_v55 = vmul.f32 0.5, %v297_v30 }
  0xf2   :  { %1179 = vtanh.f32 %v272_v31  ;;  %v275_v50 = vmul.f32 0.5, %v249_v32  ;;  %v244_v51 = vadd.f32 %v1527_v49, %v243_v35  ;;  %v312_v52 = vmul.f32 0.5, %v296_v33  ;;  %1137 = vmatpush3.msra.mxu1 %v1471_v36 }
  0xf3   :  { %v1168_v53 = vpop.eup %1167  ;;  %v1008_v54 = vpop.f32.mrf.mxu0  ;;  %v299_v56 = vadd.f32 1.0, %v1166_v34  ;;  %1122 = vmatprep.subr.mxu1 %v1473_v37 }
  0xf4   :  { %1181 = vtanh.f32 %v275_v50  ;;  %v274_v57 = vmul.f32 0.5, %v244_v51  ;;  %v259_v58 = vadd.f32 %v1008_v54, %v1527_v49  ;;  %1044 = vmatprep.mubr.f32.mxu1 %v312_v52  ;;  %v298_v59 = vadd.f32 1.0, %v1168_v53  ;;  %1138 = vmatpush3.msra.mxu1 %v1473_v37 }
  0xf5   :  { %v1170_v60 = vpop.eup %1169  ;;  %v253_v61 = vpop.f32.mrf.mxu0  ;;  %1045 = vmatmul.mubr.f32.gmra.mxu1 %v313_v55  ;;  %v315_v62 = vmul.f32 0.5, %v299_v56  ;;  %1123 = vmatprep.subr.mxu1 %v1478_v38 }
  0xf6   :  { %1183 = vtanh.f32 %v274_v57  ;;  %v277_v36 = vmul.f32 0.5, %v259_v58  ;;  %v254_v63 = vadd.f32 %v1527_v49, %v253_v61  ;;  %v314_v0 = vmul.f32 0.5, %v298_v59  ;;  %1139 = vmatpush3.msra.mxu1 %v1478_v38 }
  0xf7   :  { %v1172_v1 = vpop.eup %1171  ;;  %v301_v2 = vadd.f32 1.0, %v1170_v60  ;;  %1124 = vmatprep.subr.mxu1 %v1482_v39 }
  0xf8   :  { %1185 = vtanh.f32 %v277_v36  ;;  %v276_v3 = vmul.f32 0.5, %v254_v63  ;;  %1047 = vmatprep.mubr.f32.mxu1 %v314_v0  ;;  %v300_v37 = vadd.f32 1.0, %v1172_v1  ;;  %1140 = vmatpush3.msra.mxu1 %v1482_v39 }
  0xf9   :  { %v1174_v4 = vpop.eup %1173  ;;  %1048 = vmatmul.mubr.f32.gmra.mxu1 %v315_v62  ;;  %v317_v5 = vmul.f32 0.5, %v301_v2  ;;  %1125 = vmatprep.subr.mxu1 %v1486_v40 }
  0xfa   :  { %1187 = vtanh.f32 %v276_v3  ;;  %v316_v49 = vmul.f32 0.5, %v300_v37  ;;  %v303_v6 = vadd.f32 1.0, %v1174_v4  ;;  %1141 = vmatpush3.msra.mxu1 %v1486_v40 }
  0xfb   :  { %v1176_v38 = vpop.eup %1175  ;;  %1126 = vmatprep.subr.mxu1 %v1490_v41 }
  0xfc   :  { %1050 = vmatprep.mubr.f32.mxu1 %v316_v49  ;;  %v302_v7 = vadd.f32 1.0, %v1176_v38  ;;  %1142 = vmatpush3.msra.mxu1 %v1490_v41  ;;  %v319_v39 = vmul.f32 0.5, %v303_v6 }
  0xfd   :  { %v1178_v8 = vpop.eup %1177  ;;  %1051 = vmatmul.mubr.f32.gmra.mxu1 %v317_v5  ;;  %1127 = vmatprep.subr.mxu1 %v1494_v42 }
  0xfe   :  { %v318_v9 = vmul.f32 0.5, %v302_v7  ;;  %v305_v10 = vadd.f32 1.0, %v1178_v8  ;;  %1143 = vmatpush3.msra.mxu1 %v1494_v42 }
  0xff   :  { %v1180_v11 = vpop.eup %1179  ;;  %1128 = vmatprep.subr.mxu1 %v1498_v43 }
 0x100   :  { %1053 = vmatprep.mubr.f32.mxu1 %v318_v9  ;;  %v304_v40 = vadd.f32 1.0, %v1180_v11  ;;  %1144 = vmatpush3.msra.mxu1 %v1498_v43  ;;  %v321_v13 = vmul.f32 0.5, %v305_v10 }
 0x101   :  { %v1182_v12 = vpop.eup %1181  ;;  %1054 = vmatmul.mubr.f32.gmra.mxu1 %v319_v39  ;;  %1129 = vmatprep.subr.mxu1 %v1502_v44 }
 0x102   :  { %v320_v41 = vmul.f32 0.5, %v304_v40  ;;  %v307_v14 = vadd.f32 1.0, %v1182_v12  ;;  %1145 = vmatpush3.msra.mxu1 %v1502_v44 }
 0x103   :  { %v1184_v15 = vpop.eup %1183  ;;  %1130 = vmatprep.subr.mxu1 %v1506_v45 }
 0x104   :  { %1056 = vmatprep.mubr.f32.mxu1 %v320_v41  ;;  %v306_v42 = vadd.f32 1.0, %v1184_v15  ;;  %1146 = vmatpush3.msra.mxu1 %v1506_v45  ;;  %v323_v17 = vmul.f32 0.5, %v307_v14  ;;  %v678_v41 = vlaneseq  ;;  %v892_v15 = vld [vmem:[%s1727_s6] ss:$0 sm:$0xff]  ;;  %s1300_s6 = smov [#allocation5]  }
 0x105   :  { %v1186_v16 = vpop.eup %1185  ;;  %1057 = vmatmul.mubr.f32.gmra.mxu1 %v321_v13  ;;  %1131 = vmatprep.subr.mxu1 %v1510_v46  ;;  %s862_s13 = sshll.u32 %s1300_s6, 4  ;;  %s863_s13 = int_to_ptr.vmem [resolvable:$true] %s862_s13 }
 0x106   :  { %v322_v43 = vmul.f32 0.5, %v306_v42  ;;  %v309_v18 = vadd.f32 1.0, %v1186_v16  ;;  %1147 = vmatpush3.msra.mxu1 %v1510_v46  ;;  %v511_v46 = vld [vmem:[#allocation2 + $0x8] sm:$0xff]  ;;  %v1573_v14 = vand.u32 127, %v678_v41  ;;  %s1273_s0 = scalar_lea.vmem %s863_s13, 2048  ;;  %p1278_p6 = scmp.lt.s32.totalorder %s863_s13, %s863_s13 }
 0x107   :  { %v1188_v19 = vpop.eup %1187  ;;  %1132 = vmatprep.subr.mxu1 %v1514_v47  ;;  %1093 = vmatprep.subr.mxu0 %v511_v46  ;;  %p1274_p5 = scmp.ne.s32.totalorder %s863_s13, %s1273_s0  ;;  %p1279_p7 = scmp.lt.s32.totalorder %s1273_s0, %s1273_s0 }
 0x108   :  { %1059 = vmatprep.mubr.f32.mxu1 %v322_v43  ;;  %v308_v44 = vadd.f32 1.0, %v1188_v19  ;;  %1148 = vmatpush3.msra.mxu1 %v1514_v47  ;;  %v325_v20 = vmul.f32 0.5, %v309_v18  ;;  %v891_v47 = vld [vmem:[%s1726_s5] ss:$0 sm:$0xff]  ;;  %vm680_vm1 = vcmp.lt.s32.totalorder %v1573_v14, 16 }
 0x109   :  { %1060 = vmatmul.mubr.f32.gmra.mxu1 %v323_v17  ;;  %1133 = vmatprep.subr.mxu1 %v1518_v48  ;;  %p1280_p8 = por %p1279_p7, %p1278_p6 }
 0x10a   :  { %v324_v45 = vmul.f32 0.5, %v308_v44  ;;  %1149 = vmatpush3.msra.mxu1 %v1518_v48  ;;  %1094 = vmatpush3.msra.mxu0 %v511_v46 }
 0x10b   :  { %1134 = vmatprep.subr.mxu1 %v512_v21  ;;  %1095 = vmatprep.subr.mxu0 %v510_v22  ;;  %p1281_p9 = pnand %p1280_p8, %p1274_p5 }
 0x10c   :  { %1062 = vmatprep.mubr.f32.mxu1 %v324_v45  ;;  %1150 = vmatpush3.msra.mxu1 %v512_v21 }
 0x10d   :  { %1063 = vmatmul.mubr.f32.gmra.mxu1 %v325_v20  ;;  %1135 = vmatprep.subr.mxu1 %v511_v46 }
 0x10e   :  { %1151 = vmatpush3.msra.mxu1 %v511_v46  ;;  %1096 = vmatpush3.msra.mxu0 %v510_v22 }
 0x10f   :  { %1136 = vmatprep.subr.mxu1 %v510_v22 }
 0x110   :  { %1152 = vmatpush3.msra.mxu1 %v510_v22 }
 0x1b1   :  { %v1043_v48 = vpop.f32.mrf.mxu1 }
 0x1b2   :  { %v421_v23 = vadd.f32 %v1043_v48, %v891_v47 }
 0x1b3   :  { %v415_v24 = vpop.f32.mrf.mxu1 }
 0x1b4   :  { %v416_v25 = vadd.f32 %v891_v47, %v415_v24  ;;  %v495_v28 = vmax.f32 %v421_v23, 0.0 }
 0x1b5   :  { %v1046_v26 = vpop.f32.mrf.mxu1 }
 0x1b6   :  { %v494_v27 = vmax.f32 %v416_v25, 0.0  ;;  %v431_v29 = vadd.f32 %v1046_v26, %v891_v47 }
 0x1b7   :  { %v425_v30 = vpop.f32.mrf.mxu1 }
 0x1b8   :  { %v426_v31 = vadd.f32 %v891_v47, %v425_v30  ;;  %1097 = vmatprep.mubr.f32.mxu0 %v494_v27  ;;  %v497_v34 = vmax.f32 %v431_v29, 0.0 }
 0x1b9   :  { %v1049_v32 = vpop.f32.mrf.mxu1  ;;  %1098 = vmatmul.mubr.f32.vlgmr.msra.gmra.mxu0 %v495_v28 }
 0x1ba   :  { %v496_v33 = vmax.f32 %v426_v31, 0.0  ;;  %v441_v35 = vadd.f32 %v1049_v32, %v891_v47 }
 0x1bb   :  { %v435_v50 = vpop.f32.mrf.mxu1 }
 0x1bc   :  { %v436_v51 = vadd.f32 %v891_v47, %v435_v50  ;;  %1100 = vmatprep.mubr.f32.mxu0 %v496_v33  ;;  %v499_v54 = vmax.f32 %v441_v35, 0.0 }
 0x1bd   :  { %v1052_v52 = vpop.f32.mrf.mxu1  ;;  %1101 = vmatmul.mubr.f32.gmra.mxu0 %v497_v34 }
 0x1be   :  { %v498_v53 = vmax.f32 %v436_v51, 0.0  ;;  %v451_v55 = vadd.f32 %v1052_v52, %v891_v47 }
 0x1bf   :  { %v445_v56 = vpop.f32.mrf.mxu1 }
 0x1c0   :  { %v446_v57 = vadd.f32 %v891_v47, %v445_v56  ;;  %1103 = vmatprep.mubr.f32.mxu0 %v498_v53  ;;  %v501_v60 = vmax.f32 %v451_v55, 0.0 }
 0x1c1   :  { %v1055_v58 = vpop.f32.mrf.mxu1  ;;  %1104 = vmatmul.mubr.f32.gmra.mxu0 %v499_v54 }
 0x1c2   :  { %v500_v59 = vmax.f32 %v446_v57, 0.0  ;;  %v461_v61 = vadd.f32 %v1055_v58, %v891_v47 }
 0x1c3   :  { %v455_v62 = vpop.f32.mrf.mxu1 }
 0x1c4   :  { %v456_v36 = vadd.f32 %v891_v47, %v455_v62  ;;  %1106 = vmatprep.mubr.f32.mxu0 %v500_v59  ;;  %v503_v1 = vmax.f32 %v461_v61, 0.0 }
 0x1c5   :  { %v1058_v63 = vpop.f32.mrf.mxu1  ;;  %1107 = vmatmul.mubr.f32.gmra.mxu0 %v501_v60 }
 0x1c6   :  { %v502_v0 = vmax.f32 %v456_v36, 0.0  ;;  %v471_v2 = vadd.f32 %v1058_v63, %v891_v47 }
 0x1c7   :  { %v465_v3 = vpop.f32.mrf.mxu1 }
 0x1c8   :  { %v466_v37 = vadd.f32 %v891_v47, %v465_v3  ;;  %1109 = vmatprep.mubr.f32.mxu0 %v502_v0  ;;  %v505_v49 = vmax.f32 %v471_v2, 0.0 }
 0x1c9   :  { %v1061_v4 = vpop.f32.mrf.mxu1  ;;  %1110 = vmatmul.mubr.f32.gmra.mxu0 %v503_v1 }
 0x1ca   :  { %v504_v5 = vmax.f32 %v466_v37, 0.0  ;;  %v481_v6 = vadd.f32 %v1061_v4, %v891_v47 }
 0x1cb   :  { %v475_v38 = vpop.f32.mrf.mxu1 }
 0x1cc   :  { %v476_v7 = vadd.f32 %v891_v47, %v475_v38  ;;  %1112 = vmatprep.mubr.f32.mxu0 %v504_v5  ;;  %v507_v9 = vmax.f32 %v481_v6, 0.0 }
 0x1cd   :  { %v1064_v8 = vpop.f32.mrf.mxu1  ;;  %1113 = vmatmul.mubr.f32.gmra.mxu0 %v505_v49 }
 0x1ce   :  { %v506_v39 = vmax.f32 %v476_v7, 0.0  ;;  %v491_v10 = vadd.f32 %v1064_v8, %v891_v47 }
 0x1cf   :  { %v485_v11 = vpop.f32.mrf.mxu1 }
 0x1d0   :  { %v486_v40 = vadd.f32 %v891_v47, %v485_v11  ;;  %1115 = vmatprep.mubr.f32.mxu0 %v506_v39  ;;  %v509_v13 = vmax.f32 %v491_v10, 0.0 }
 0x1d1   :  { %1116 = vmatmul.mubr.f32.gmra.mxu0 %v507_v9 }
 0x1d2   :  { %v508_v12 = vmax.f32 %v486_v40, 0.0 }
 0x1d4   :  { %1118 = vmatprep.mubr.f32.mxu1 %v508_v12 }
 0x1d5   :  { %1119 = vmatmul.mubr.f32.vlgmr.msra.gmra.mxu1 %v509_v13 }
 0x279   :  { %v1099_v42 = vpop.f32.mrf.mxu0 }
 0x27a   :  { %v605_v16 = vadd.f32 %v1099_v42, %v892_v15 }
 0x27b   :  { %v599_v17 = vpop.f32.mrf.mxu0 }
 0x27c   :  { %v600_v43 = vadd.f32 %v892_v15, %v599_v17  ;;  %v682_v18 = vsel %vm680_vm1, %v605_v16, -1e+30 }
 0x27d   :  { %699 = vmax.xlane.f32.xlu0 %v682_v18  ;;  %v1102_v19 = vpop.f32.mrf.mxu0 }
 0x27e   :  { %v615_v44 = vadd.f32 %v1102_v19, %v892_v15  ;;  %v681_v46 = vsel %vm680_vm1, %v600_v43, -1e+30 }
 0x27f   :  { %v609_v20 = vpop.f32.mrf.mxu0 }
 0x280   :  { %v610_v45 = vadd.f32 %v892_v15, %v609_v20  ;;  %v684_v21 = vsel %vm680_vm1, %v615_v44, -1e+30 }
 0x281   :  { %703 = vmax.xlane.f32.xlu1 %v684_v21  ;;  %v1105_v22 = vpop.f32.mrf.mxu0  ;;  %697 = vmax.xlane.f32.xlu0 %v681_v46 }
 0x282   :  { %v625_v48 = vadd.f32 %v1105_v22, %v892_v15  ;;  %v683_v24 = vsel %vm680_vm1, %v610_v45, -1e+30 }
 0x283   :  { %v619_v47 = vpop.f32.mrf.mxu0 }
 0x284   :  { %v620_v23 = vadd.f32 %v892_v15, %v619_v47  ;;  %v686_v30 = vsel %vm680_vm1, %v625_v48, -1e+30 }
 0x285   :  { %v1108_v25 = vpop.f32.mrf.mxu0  ;;  %701 = vmax.xlane.f32.xlu1 %v683_v24 }
 0x286   :  { %v1589_v26 = vsel %vm680_vm1, %v620_v23, -1e+30  ;;  %v635_v28 = vadd.f32 %v1108_v25, %v892_v15 }
 0x287   :  { %v629_v27 = vpop.f32.mrf.mxu0  ;;  %705 = vmax.xlane.f32.xlu0 %v1589_v26 }
 0x288   :  { %v630_v29 = vadd.f32 %v892_v15, %v629_v27  ;;  %v688_v50 = vsel %vm680_vm1, %v635_v28, -1e+30 }
 0x289   :  { %v1111_v31 = vpop.f32.mrf.mxu0  ;;  %707 = vmax.xlane.f32.xlu1 %v686_v30 }
 0x28a   :  { %v1596_v32 = vsel %vm680_vm1, %v630_v29, -1e+30  ;;  %v645_v34 = vadd.f32 %v1111_v31, %v892_v15 }
 0x28b   :  { %v639_v33 = vpop.f32.mrf.mxu0  ;;  %709 = vmax.xlane.f32.xlu0 %v1596_v32 }
 0x28c   :  { %v640_v35 = vadd.f32 %v892_v15, %v639_v33  ;;  %v1608_v56 = vsel %vm680_vm1, %v645_v34, -1e+30 }
 0x28d   :  { %v1114_v51 = vpop.f32.mrf.mxu0  ;;  %711 = vmax.xlane.f32.xlu1 %v688_v50 }
 0x28e   :  { %v1603_v52 = vsel %vm680_vm1, %v640_v35, -1e+30  ;;  %v655_v54 = vadd.f32 %v1114_v51, %v892_v15 }
 0x28f   :  { %v649_v53 = vpop.f32.mrf.mxu0  ;;  %713 = vmax.xlane.f32.xlu0 %v1603_v52 }
 0x290   :  { %v650_v55 = vadd.f32 %v892_v15, %v649_v53  ;;  %v1618_v62 = vsel %vm680_vm1, %v655_v54, -1e+30 }
 0x291   :  { %v1117_v57 = vpop.f32.mrf.mxu0  ;;  %715 = vmax.xlane.f32.xlu1 %v1608_v56 }
 0x292   :  { %v1613_v58 = vsel %vm680_vm1, %v650_v55, -1e+30  ;;  %v665_v60 = vadd.f32 %v1117_v57, %v892_v15 }
 0x293   :  { %v659_v59 = vpop.f32.mrf.mxu0  ;;  %717 = vmax.xlane.f32.xlu0 %v1613_v58 }
 0x294   :  { %v660_v61 = vadd.f32 %v892_v15, %v659_v59  ;;  %v1628_v3 = vsel %vm680_vm1, %v665_v60, -1e+30 }
 0x295   :  { %v1120_v36 = vpop.f32.mrf.mxu1  ;;  %719 = vmax.xlane.f32.xlu1 %v1618_v62 }
 0x296   :  { %v1623_v63 = vsel %vm680_vm1, %v660_v61, -1e+30  ;;  %v675_v1 = vadd.f32 %v1120_v36, %v892_v15 }
 0x297   :  { %v669_v0 = vpop.f32.mrf.mxu1  ;;  %721 = vmax.xlane.f32.xlu0 %v1623_v63 }
 0x298   :  { %v670_v2 = vadd.f32 %v892_v15, %v669_v0  ;;  %v1638_v4 = vsel %vm680_vm1, %v675_v1, -1e+30 }
 0x299   :  { %723 = vmax.xlane.f32.xlu1 %v1628_v3 }
 0x29a   :  { %v1633_v37 = vsel %vm680_vm1, %v670_v2, -1e+30 }
 0x29b   :  { %725 = vmax.xlane.f32.xlu0 %v1633_v37 }
 0x29d   :  { %727 = vmax.xlane.f32.xlu1 %v1638_v4 }
 0x306   :  { %v700_v5 = vpop.xlane.xlu0 %699 }
 0x307   :  { %v730_v49 = vsub.f32 %v682_v18, %v700_v5 }
 0x309   :  { %v747_v6 = vmul.f32 1.442695, %v730_v49 }
 0x30a   :  { %v704_v38 = vpop.xlane.xlu1 %703  ;;  %v698_v7 = vpop.xlane.xlu0 %697 }
 0x30b   :  { %1189 = vpow2.f32 %v747_v6  ;;  %v732_v8 = vsub.f32 %v684_v21, %v704_v38  ;;  %v729_v39 = vsub.f32 %v681_v46, %v698_v7 }
 0x30d   :  { %v751_v9 = vmul.f32 1.442695, %v732_v8  ;;  %v745_v10 = vmul.f32 1.442695, %v729_v39 }
 0x30e   :  { %v702_v11 = vpop.xlane.xlu1 %701 }
 0x30f   :  { %1191 = vpow2.f32 %v751_v9  ;;  %v731_v40 = vsub.f32 %v683_v24, %v702_v11 }
 0x310   :  { %1193 = vpow2.f32 %v745_v10  ;;  %v706_v12 = vpop.xlane.xlu0 %705 }
 0x311   :  { %v749_v13 = vmul.f32 1.442695, %v731_v40  ;;  %v733_v41 = vsub.f32 %v1589_v26, %v706_v12 }
 0x312   :  { %v708_v14 = vpop.xlane.xlu1 %707 }
 0x313   :  { %1195 = vpow2.f32 %v749_v13  ;;  %v734_v15 = vsub.f32 %v686_v30, %v708_v14  ;;  %v753_v42 = vmul.f32 1.442695, %v733_v41 }
 0x314   :  { %v710_v16 = vpop.xlane.xlu0 %709 }
 0x315   :  { %v755_v17 = vmul.f32 1.442695, %v734_v15  ;;  %v735_v43 = vsub.f32 %v1596_v32, %v710_v16 }
 0x316   :  { %v712_v18 = vpop.xlane.xlu1 %711 }
 0x317   :  { %1197 = vpow2.f32 %v755_v17  ;;  %v736_v19 = vsub.f32 %v688_v50, %v712_v18  ;;  %v757_v20 = vmul.f32 1.442695, %v735_v43 }
 0x318   :  { %v1643_v44 = vpop.eup %1189  ;;  %1199 = vpow2.f32 %v753_v42  ;;  %v714_v45 = vpop.xlane.xlu0 %713 }
 0x319   :  { %v759_v21 = vmul.f32 1.442695, %v736_v19  ;;  %v737_v46 = vsub.f32 %v1603_v52, %v714_v45  ;;  %779 = vadd.xlane.f32.xlu1 %v1643_v44 }
 0x31a   :  { %v716_v22 = vpop.xlane.xlu1 %715 }
 0x31b   :  { %1201 = vpow2.f32 %v759_v21  ;;  %v738_v47 = vsub.f32 %v1608_v56, %v716_v22  ;;  %v761_v23 = vmul.f32 1.442695, %v737_v46 }
 0x31c   :  { %v1648_v48 = vpop.eup %1191  ;;  %1203 = vpow2.f32 %v757_v20  ;;  %v718_v24 = vpop.xlane.xlu0 %717 }
 0x31d   :  { %v1650_v25 = vpop.eup %1193  ;;  %v763_v26 = vmul.f32 1.442695, %v738_v47  ;;  %v739_v27 = vsub.f32 %v1613_v58, %v718_v24  ;;  %783 = vadd.xlane.f32.xlu1 %v1648_v48 }
 0x31e   :  { %777 = vadd.xlane.f32.xlu0 %v1650_v25  ;;  %v720_v28 = vpop.xlane.xlu1 %719 }
 0x31f   :  { %1205 = vpow2.f32 %v763_v26  ;;  %v740_v29 = vsub.f32 %v1618_v62, %v720_v28  ;;  %v765_v31 = vmul.f32 1.442695, %v739_v27 }
 0x320   :  { %v1656_v30 = vpop.eup %1195  ;;  %1207 = vpow2.f32 %v761_v23  ;;  %v722_v32 = vpop.xlane.xlu0 %721 }
 0x321   :  { %v767_v33 = vmul.f32 1.442695, %v740_v29  ;;  %v741_v34 = vsub.f32 %v1623_v63, %v722_v32 }
 0x322   :  { %781 = vadd.xlane.f32.xlu0 %v1656_v30  ;;  %v724_v35 = vpop.xlane.xlu1 %723 }
 0x323   :  { %1209 = vpow2.f32 %v767_v33  ;;  %v742_v50 = vsub.f32 %v1628_v3, %v724_v35  ;;  %v769_v52 = vmul.f32 1.442695, %v741_v34 }
 0x324   :  { %v1661_v51 = vpop.eup %1197  ;;  %1211 = vpow2.f32 %v765_v31  ;;  %v726_v53 = vpop.xlane.xlu0 %725 }
 0x325   :  { %v1663_v54 = vpop.eup %1199  ;;  %v771_v55 = vmul.f32 1.442695, %v742_v50  ;;  %v743_v56 = vsub.f32 %v1633_v37, %v726_v53  ;;  %787 = vadd.xlane.f32.xlu1 %v1661_v51 }
 0x326   :  { %785 = vadd.xlane.f32.xlu0 %v1663_v54  ;;  %v728_v57 = vpop.xlane.xlu1 %727 }
 0x327   :  { %1213 = vpow2.f32 %v771_v55  ;;  %v744_v58 = vsub.f32 %v1638_v4, %v728_v57  ;;  %v773_v60 = vmul.f32 1.442695, %v743_v56 }
 0x328   :  { %v1669_v59 = vpop.eup %1201  ;;  %1215 = vpow2.f32 %v769_v52 }
 0x329   :  { %v1671_v61 = vpop.eup %1203  ;;  %v775_v62 = vmul.f32 1.442695, %v744_v58  ;;  %791 = vadd.xlane.f32.xlu1 %v1669_v59 }
 0x32a   :  { %789 = vadd.xlane.f32.xlu0 %v1671_v61 }
 0x32b   :  { %1217 = vpow2.f32 %v775_v62 }
 0x32c   :  { %v1675_v36 = vpop.eup %1205  ;;  %1219 = vpow2.f32 %v773_v60 }
 0x32d   :  { %v1677_v63 = vpop.eup %1207  ;;  %795 = vadd.xlane.f32.xlu1 %v1675_v36 }
 0x32e   :  { %793 = vadd.xlane.f32.xlu0 %v1677_v63 }
 0x330   :  { %v1681_v0 = vpop.eup %1209 }
 0x331   :  { %v1683_v1 = vpop.eup %1211  ;;  %799 = vadd.xlane.f32.xlu1 %v1681_v0 }
 0x332   :  { %797 = vadd.xlane.f32.xlu0 %v1683_v1 }
 0x334   :  { %v1687_v2 = vpop.eup %1213 }
 0x335   :  { %v1689_v3 = vpop.eup %1215  ;;  %803 = vadd.xlane.f32.xlu1 %v1687_v2 }
 0x336   :  { %801 = vadd.xlane.f32.xlu0 %v1689_v3 }
 0x338   :  { %v1693_v37 = vpop.eup %1217 }
 0x339   :  { %v1695_v4 = vpop.eup %1219  ;;  %807 = vadd.xlane.f32.xlu1 %v1693_v37 }
 0x33a   :  { %805 = vadd.xlane.f32.xlu0 %v1695_v4 }
 0x3a2   :  { %v780_v5 = vpop.xlane.xlu1 %779 }
 0x3a3   :  { %1221 = vrcp.f32 %v780_v5 }
 0x3a6   :  { %v784_v49 = vpop.xlane.xlu1 %783 }
 0x3a7   :  { %1223 = vrcp.f32 %v784_v49  ;;  %v778_v6 = vpop.xlane.xlu0 %777 }
 0x3a8   :  { %1225 = vrcp.f32 %v778_v6 }
 0x3ab   :  { %v782_v38 = vpop.xlane.xlu0 %781 }
 0x3ac   :  { %1227 = vrcp.f32 %v782_v38 }
 0x3ae   :  { %v788_v7 = vpop.xlane.xlu1 %787 }
 0x3af   :  { %1229 = vrcp.f32 %v788_v7  ;;  %v786_v8 = vpop.xlane.xlu0 %785 }
 0x3b0   :  { %v1222_v39 = vpop.eup %1221  ;;  %1231 = vrcp.f32 %v786_v8 }
 0x3b1   :  { %v812_v9 = vmul.f32 %v1222_v39, %v1643_v44 }
 0x3b2   :  { %v792_v10 = vpop.xlane.xlu1 %791 }
 0x3b3   :  { %842 = vst [vmem:[#allocation5 + $0x8] sm:$0xff] %v812_v9  ;;  %1233 = vrcp.f32 %v792_v10  ;;  %v790_v11 = vpop.xlane.xlu0 %789 }
 0x3b4   :  { %v1224_v40 = vpop.eup %1223  ;;  %1235 = vrcp.f32 %v790_v11 }
 0x3b5   :  { %v1226_v12 = vpop.eup %1225  ;;  %v816_v13 = vmul.f32 %v1224_v40, %v1648_v48 }
 0x3b6   :  { %v810_v41 = vmul.f32 %v1226_v12, %v1650_v25  ;;  %v796_v14 = vpop.xlane.xlu1 %795 }
 0x3b7   :  { %844 = vst [vmem:[#allocation5 + $0x18] sm:$0xff] %v816_v13  ;;  %1237 = vrcp.f32 %v796_v14  ;;  %v794_v15 = vpop.xlane.xlu0 %793 }
 0x3b8   :  { %841 = vst [vmem:[#allocation5] sm:$0xff] %v810_v41  ;;  %1239 = vrcp.f32 %v794_v15 }
 0x3b9   :  { %v1228_v42 = vpop.eup %1227 }
 0x3ba   :  { %v814_v16 = vmul.f32 %v1228_v42, %v1656_v30  ;;  %v800_v17 = vpop.xlane.xlu1 %799 }
 0x3bb   :  { %1241 = vrcp.f32 %v800_v17  ;;  %v798_v43 = vpop.xlane.xlu0 %797 }
 0x3bc   :  { %v1230_v18 = vpop.eup %1229  ;;  %843 = vst [vmem:[#allocation5 + $0x10] sm:$0xff] %v814_v16  ;;  %1243 = vrcp.f32 %v798_v43 }
 0x3bd   :  { %v1232_v19 = vpop.eup %1231  ;;  %v820_v44 = vmul.f32 %v1230_v18, %v1661_v51 }
 0x3be   :  { %v818_v20 = vmul.f32 %v1232_v19, %v1663_v54  ;;  %v804_v45 = vpop.xlane.xlu1 %803 }
 0x3bf   :  { %846 = vst [vmem:[#allocation5 + $0x28] sm:$0xff] %v820_v44  ;;  %1245 = vrcp.f32 %v804_v45  ;;  %v802_v21 = vpop.xlane.xlu0 %801 }
 0x3c0   :  { %v1234_v46 = vpop.eup %1233  ;;  %845 = vst [vmem:[#allocation5 + $0x20] sm:$0xff] %v818_v20  ;;  %1247 = vrcp.f32 %v802_v21 }
 0x3c1   :  { %v1236_v22 = vpop.eup %1235  ;;  %v824_v47 = vmul.f32 %v1234_v46, %v1669_v59 }
 0x3c2   :  { %v822_v48 = vmul.f32 %v1236_v22, %v1671_v61  ;;  %v808_v23 = vpop.xlane.xlu1 %807 }
 0x3c3   :  { %848 = vst [vmem:[#allocation5 + $0x38] sm:$0xff] %v824_v47  ;;  %1249 = vrcp.f32 %v808_v23  ;;  %v806_v24 = vpop.xlane.xlu0 %805 }
 0x3c4   :  { %v1238_v25 = vpop.eup %1237  ;;  %847 = vst [vmem:[#allocation5 + $0x30] sm:$0xff] %v822_v48  ;;  %1251 = vrcp.f32 %v806_v24 }
 0x3c5   :  { %v1240_v26 = vpop.eup %1239  ;;  %v828_v27 = vmul.f32 %v1238_v25, %v1675_v36 }
 0x3c6   :  { %v826_v28 = vmul.f32 %v1240_v26, %v1677_v63 }
 0x3c7   :  { %850 = vst [vmem:[#allocation5 + $0x48] sm:$0xff] %v828_v27 }
 0x3c8   :  { %v1242_v29 = vpop.eup %1241  ;;  %849 = vst [vmem:[#allocation5 + $0x40] sm:$0xff] %v826_v28 }
 0x3c9   :  { %v1244_v30 = vpop.eup %1243  ;;  %v832_v31 = vmul.f32 %v1242_v29, %v1681_v0 }
 0x3ca   :  { %v830_v32 = vmul.f32 %v1244_v30, %v1683_v1 }
 0x3cb   :  { %852 = vst [vmem:[#allocation5 + $0x58] sm:$0xff] %v832_v31 }
 0x3cc   :  { %v1246_v33 = vpop.eup %1245  ;;  %851 = vst [vmem:[#allocation5 + $0x50] sm:$0xff] %v830_v32 }
 0x3cd   :  { %v1248_v34 = vpop.eup %1247  ;;  %v836_v35 = vmul.f32 %v1246_v33, %v1687_v2 }
 0x3ce   :  { %v834_v50 = vmul.f32 %v1248_v34, %v1689_v3 }
 0x3cf   :  { %854 = vst [vmem:[#allocation5 + $0x68] sm:$0xff] %v836_v35 }
 0x3d0   :  { %v1250_v51 = vpop.eup %1249  ;;  %853 = vst [vmem:[#allocation5 + $0x60] sm:$0xff] %v834_v50 }
 0x3d1   :  { %v1252_v52 = vpop.eup %1251  ;;  %v840_v53 = vmul.f32 %v1250_v51, %v1693_v37 }
 0x3d2   :  { %v838_v54 = vmul.f32 %v1252_v52, %v1695_v4 }
 0x3d3   :  { %856 = vst [vmem:[#allocation5 + $0x78] sm:$0xff] %v840_v53 }
 0x3d4   :  { %855 = vst [vmem:[#allocation5 + $0x70] sm:$0xff] %v838_v54 }
 0x3d5   :  { %1284 = shalt.err (!%p1281_p9)
}
 0x3d6   :  { %868 = dma.vmem_to_hbm [thread:$0]  %s863_s13, 2048, %s1728_s7, [#allocation4], %s1298_s27, %s1298_s27, %s1299_s28  }
 0x3d7   :  { %1295 = dma.done.wait [#allocation4], 2048  }
 0x3d8   :  { %1296 = vsyncadd [#allocation4], 4294965248 }
 0x3d9   :  { %872 = vsyncpa [#allocation3], 1 }
 0x3da   :  { %873 = vsyncpa [#allocation4], 1 }

</bundles_post_ra>
